<compile_context>
chip_gen: v7x
topology: tpu7x:2x2x1
jax: 0.10.0
libtpu: 0.0.40
codegen_flags: <defaults>
</compile_context>

<pallas_src>
import jax
import jax.numpy as jnp
from jax import lax
from jax.experimental import pallas as pl
from jax.experimental.pallas import tpu as pltpu


def _round_up(x, m):
    return ((x + m - 1) // m) * m


def _pick_tile(padded_dim, max_tile, quantum=128):
    """Largest multiple of `quantum` <= max_tile that evenly divides padded_dim.

    padded_dim is already a multiple of `quantum`, so `quantum` itself is
    always a valid fallback.
    """
    best = quantum
    t = quantum
    limit = min(max_tile, padded_dim)
    while t <= limit:
        if padded_dim % t == 0:
            best = t
        t += quantum
    return best


def make_linear(weight, bias, *, tm=512, tn=512, tk=1024,
                compute_dtype=jnp.bfloat16):
    """One-time parameter preparation for nn.Linear forward.

    weight: (output_size, input_size)  -- PyTorch layout.
    bias:   (output_size,)

    Pads OUT/IN to lane multiples, transposes the weight to (K_pad, N_pad) and
    casts it to `compute_dtype` ONCE at init.  Returns forward(x) computing
    x @ weight.T + bias with f32 accumulation.
    """
    OUT, IN = weight.shape

    n_pad = _round_up(OUT, 128)
    k_pad = _round_up(IN, 128)
    tk_ = _pick_tile(k_pad, tk)                   # K tile divides K_pad exactly

    # Static parameters: pad + transpose + cast once (init cost, not per call).
    w_pad = jnp.pad(weight, ((0, n_pad - OUT), (0, k_pad - IN))).T  # (K_pad, N_pad)
    w_pad = w_pad.astype(compute_dtype)
    b_pad = jnp.pad(bias, (0, n_pad - OUT)).reshape(1, n_pad).astype(jnp.float32)

    # bf16 packs 16 sublanes per vreg; f32 packs 8.
    sub = 16 if compute_dtype == jnp.bfloat16 else 8
    # If staying in f32, request real f32 MXU passes (default lowers via bf16).
    precision = (lax.Precision.HIGHEST if compute_dtype == jnp.float32
                 else lax.Precision.DEFAULT)

    def _linear_kernel(x_ref, w_ref, b_ref, o_ref):
        # x_ref: (tm, tk) compute_dtype   activations
        # w_ref: (tk, tn) compute_dtype   pre-transposed weight tile
        # b_ref: (1,  tn) f32             bias tile (depends on j only)
        # o_ref: (tm, tn) f32             output tile, resident across the K axis
        k = pl.program_id(2)
        partial = jnp.dot(x_ref[...], w_ref[...],
                          preferred_element_type=jnp.float32,
                          precision=precision)

        @pl.when(k == 0)
        def _():
            o_ref[...] = partial + b_ref[...]

        @pl.when(k != 0)
        def _():
            o_ref[...] += partial

    def forward(x):
        B, in_x = x.shape
        assert in_x == IN, f"expected input size {IN}, got {in_x}"

        m_pad = _round_up(B, sub)
        tm_ = _pick_tile(m_pad, tm, quantum=sub)
        tn_ = _pick_tile(n_pad, tn)

        # v7x megacore: a 1x1x(K) grid leaves one TensorCore idle; split N so
        # the "parallel" axes actually shard.  Harmless on v5e/v6e (single TC).
        if m_pad // tm_ == 1 and n_pad // tn_ == 1 and n_pad >= 256:
            tn_ = _pick_tile(n_pad, n_pad // 2)

        x_c = x.astype(compute_dtype)
        if m_pad != B or k_pad != IN:
            x_c = jnp.pad(x_c, ((0, m_pad - B), (0, k_pad - IN)))

        grid = (m_pad // tm_, n_pad // tn_, k_pad // tk_)

        y_pad = pl.pallas_call(
            _linear_kernel,
            out_shape=jax.ShapeDtypeStruct((m_pad, n_pad), jnp.float32),
            grid_spec=pltpu.PrefetchScalarGridSpec(
                num_scalar_prefetch=0,
                grid=grid,
                in_specs=[
                    pl.BlockSpec((tm_, tk_), lambda i, j, k: (i, k)),   # x
                    pl.BlockSpec((tk_, tn_), lambda i, j, k: (k, j)),   # weight (K,N)
                    pl.BlockSpec((1, tn_), lambda i, j, k: (0, j)),     # bias
                ],
                out_specs=pl.BlockSpec((tm_, tn_), lambda i, j, k: (i, j)),
            ),
            compiler_params=pltpu.CompilerParams(
                dimension_semantics=("parallel", "parallel", "arbitrary")),
        )(x_c, w_pad, b_pad)

        if m_pad != B or n_pad != OUT:
            y_pad = y_pad[:B, :OUT]
        return y_pad

    return forward


if __name__ == "__main__":
    key = jax.random.PRNGKey(0)

    # --- small shapes matching the module's toy usage -----------------------
    input_size, output_size, batch = 32, 16, 8
    kx, kw, kb = jax.random.split(key, 3)
    x = jax.random.normal(kx, (batch, input_size), dtype=jnp.float32)
    weight = jax.random.normal(kw, (output_size, input_size), dtype=jnp.float32) * 0.1
    bias = jax.random.normal(kb, (output_size,), dtype=jnp.float32) * 0.1

    fwd = jax.jit(make_linear(weight, bias))
    y = jax.block_until_ready(fwd(x))
    y_ref = x @ weight.T + bias
    assert y.shape == y_ref.shape
    # bf16 inputs, f32 accumulation -> bf16-class tolerance.
    assert jnp.allclose(y, y_ref, atol=2e-2, rtol=2e-2), "small-shape mismatch"

    # --- larger shapes: multiple N and K tiles (accumulation + megacore split)
    B2, IN2, OUT2 = 512, 768, 384
    k2x, k2w, k2b = jax.random.split(jax.random.PRNGKey(1), 3)
    x2 = jax.random.normal(k2x, (B2, IN2), dtype=jnp.float32)
    w2 = jax.random.normal(k2w, (OUT2, IN2), dtype=jnp.float32) * 0.05
    b2 = jax.random.normal(k2b, (OUT2,), dtype=jnp.float32) * 0.05

    fwd2 = jax.jit(make_linear(w2, b2, tk=256))     # forces 3 K steps
    y2 = jax.block_until_ready(fwd2(x2))
    y2_ref = x2 @ w2.T + b2
    assert jnp.allclose(y2, y2_ref, atol=5e-2, rtol=5e-2), "tiled-shape mismatch"

    print("KERNEL_OK")
</pallas_src>

<mosaic_0001>
module attributes {stable_mosaic.version = 11 : i64} {
  func.func @_linear_kernel(%arg0: i32, %arg1: i32, %arg2: i32, %arg3: memref<16x128xbf16, #tpu.memory_space<vmem>>, %arg4: memref<128x128xbf16, #tpu.memory_space<vmem>>, %arg5: memref<1x128xf32, #tpu.memory_space<vmem>>, %arg6: memref<16x128xf32, #tpu.memory_space<vmem>>) attributes {dimension_semantics = [#tpu.dimension_semantics<parallel>, #tpu.dimension_semantics<parallel>, #tpu.dimension_semantics<arbitrary>], iteration_bounds = array<i64: 1, 1, 1>, scalar_prefetch = 0 : i64, scratch_operands = 0 : i64, tpu.core_type = #tpu.core_type<tc>, window_params = [{transform_indices = @transform_0, window_bounds = array<i64: 16, 128>}, {transform_indices = @transform_1, window_bounds = array<i64: 128, 128>}, {transform_indices = @transform_2, window_bounds = array<i64: 1, 128>}, {transform_indices = @transform_3, window_bounds = array<i64: 16, 128>}]} {
    %c0 = arith.constant 0 : index
    %c0_0 = arith.constant 0 : index
    %0 = vector.load %arg3[%c0, %c0_0] : memref<16x128xbf16, #tpu.memory_space<vmem>>, vector<16x128xbf16>
    %c0_1 = arith.constant 0 : index
    %c0_2 = arith.constant 0 : index
    %1 = vector.load %arg4[%c0_1, %c0_2] : memref<128x128xbf16, #tpu.memory_space<vmem>>, vector<128x128xbf16>
    %cst = arith.constant dense<0.000000e+00> : vector<16x128xf32>
    %2 = tpu.matmul %0, %1, %cst {dimension_numbers = #tpu.dot_dimension_numbers<[1], [0], [0], [1], [0, 0, 1, 1], [], []>} : vector<16x128xbf16>, vector<128x128xbf16>, vector<16x128xf32> -> vector<16x128xf32>
    %c0_i32 = arith.constant 0 : i32
    %3 = arith.cmpi eq, %arg2, %c0_i32 : i32
    %4 = arith.extui %3 : i1 to i32
    %c0_i32_3 = arith.constant 0 : i32
    %5 = arith.cmpi ne, %4, %c0_i32_3 : i32
    scf.if %5 {
      %c0_6 = arith.constant 0 : index
      %c0_7 = arith.constant 0 : index
      %9 = vector.load %arg5[%c0_6, %c0_7] : memref<1x128xf32, #tpu.memory_space<vmem>>, vector<1x128xf32>
      %10 = vector.broadcast %9 : vector<1x128xf32> to vector<16x128xf32>
      %11 = arith.addf %2, %10 : vector<16x128xf32>
      %c0_8 = arith.constant 0 : index
      %c0_9 = arith.constant 0 : index
      %12 = vector.load %arg6[%c0_8, %c0_9] : memref<16x128xf32, #tpu.memory_space<vmem>>, vector<16x128xf32>
      tpu.vector_store %arg6[%c0_8, %c0_9], %11 {strides = array<i32>} : memref<16x128xf32, #tpu.memory_space<vmem>>, vector<16x128xf32>,
    } else {
    }
    %c0_i32_4 = arith.constant 0 : i32
    %6 = arith.cmpi ne, %arg2, %c0_i32_4 : i32
    %7 = arith.extui %6 : i1 to i32
    %c0_i32_5 = arith.constant 0 : i32
    %8 = arith.cmpi ne, %7, %c0_i32_5 : i32
    scf.if %8 {
      %c0_6 = arith.constant 0 : index
      %c0_7 = arith.constant 0 : index
      %9 = vector.load %arg6[%c0_6, %c0_7] : memref<16x128xf32, #tpu.memory_space<vmem>>, vector<16x128xf32>
      %10 = arith.addf %9, %2 : vector<16x128xf32>
      %c0_8 = arith.constant 0 : index
      %c0_9 = arith.constant 0 : index
      %11 = vector.load %arg6[%c0_8, %c0_9] : memref<16x128xf32, #tpu.memory_space<vmem>>, vector<16x128xf32>
      tpu.vector_store %arg6[%c0_8, %c0_9], %10 {strides = array<i32>} : memref<16x128xf32, #tpu.memory_space<vmem>>, vector<16x128xf32>,
    } else {
    }
    return
  }
  func.func @transform_0(%arg0: i32, %arg1: i32, %arg2: i32) -> (i32, i32) {
    %c0_i32 = arith.constant 0 : i32
    return %arg0, %arg2 : i32, i32
  }
  func.func @transform_1(%arg0: i32, %arg1: i32, %arg2: i32) -> (i32, i32) {
    %c0_i32 = arith.constant 0 : i32
    return %arg2, %arg1 : i32, i32
  }
  func.func @transform_2(%arg0: i32, %arg1: i32, %arg2: i32) -> (i32, i32) {
    %c0_i32 = arith.constant 0 : i32
    %c0_i32_0 = arith.constant 0 : i32
    return %c0_i32, %arg1 : i32, i32
  }
  func.func @transform_3(%arg0: i32, %arg1: i32, %arg2: i32) -> (i32, i32) {
    %c0_i32 = arith.constant 0 : i32
    return %arg0, %arg1 : i32, i32
  }
}

</mosaic_0001>

<bundles_post_ra>
// kernel: forward.1
= control target key start
LH: loop header
LB: loop body
LE: loop exit
PB: predicated region body
PF: predicated region fallthrough
CT: control target
= control target key end

     0   :  { %8 = vsyncpa [#allocation3], 0  ;;  %s249_s12 = smov [#allocation2]   ;;  %s298_s0 = inlined_call_operand.vmem [shape: bf16[16,128], index: 0, kind: input, shape index: {}]   ;;  %s299_s1 = inlined_call_operand.hbm [shape: bf16[128,128], index: 1, kind: input, shape index: {}]   ;;  %s300_s2 = inlined_call_operand.vmem [shape: f32[1,128], index: 2, kind: input, shape index: {}]   ;;  %s301_s3 = inlined_call_operand.vmem [shape: f32[16,128], index: 3, kind: output, shape index: {}]  }
   0x1   :  { %s16_s13 = sshll.u32 %s249_s12, 4  ;;  %s225_s16 = scalar_lea.hbm %s299_s1, 1024  ;;  %s17_s13 = int_to_ptr.vmem [resolvable:$true] %s16_s13 }
   0x2   :  { %p226_p0 = scmp.ne.s32.totalorder %s299_s1, %s225_s16  ;;  %p229_p1 = scmp.lt.u32.totalorder %s225_s16, %s299_s1 }
   0x4   :  { %p231_p2 = pnand %p229_p1, %p226_p0 }
   0x6   :  { %234 = shalt.err (!%p231_p2)
}
   0x7   :  { %s235_s21 = scalar_lea.vmem %s17_s13, 1024  ;;  %p240_p4 = scmp.lt.s32.totalorder %s17_s13, %s17_s13 }
   0x8   :  { %p236_p3 = scmp.ne.s32.totalorder %s17_s13, %s235_s21  ;;  %p241_p5 = scmp.lt.s32.totalorder %s235_s21, %s235_s21 }
   0xa   :  { %p242_p6 = por %p241_p5, %p240_p4 }
   0xc   :  { %p243_p7 = pnand %p242_p6, %p236_p3 }
   0xe   :  { %246 = shalt.err (!%p243_p7)
}
   0xf   :  { %s250_s22 = smov 64   ;;  %s251_s23 = smov 4  }
  0x10   :  { %22 = dma.hbm_to_vmem [thread:$0]  %s299_s1, 1024, %s17_s13, [#allocation3], %s250_s22, %s250_s22, %s251_s23  }
  0x11   :  { %247 = dma.done.wait [#allocation3], 1024  }
  0x12   :  { %248 = vsyncadd [#allocation3], 4294966272  ;;  %v252_v0 = vmov 0.0   ;;  %vm253_vm0 = vmmov 0   ;;  %v216_v1 = vld [vmem:[#allocation2] sm:$0xff]   ;;  %v217_v2 = vld [vmem:[#allocation2 + $0x8] sm:$0xff]  }
  0x13   :  { %191 = vmatprep.subr.bf16.mxu0 %v252_v0  ;;  %207 = vmatprep.mubr.msk.bf16.mxu0 %vm253_vm0, %v252_v0  ;;  %v218_v3 = vld [vmem:[#allocation2 + $0x10] sm:$0xff]   ;;  %v219_v4 = vld [vmem:[#allocation2 + $0x18] sm:$0xff]   ;;  %v220_v5 = vld [vmem:[#allocation2 + $0x20] sm:$0xff]  }
  0x14   :  { %192 = vmatpush3.bf16.msra.mxu0 %v216_v1  ;;  %v221_v6 = vld [vmem:[#allocation2 + $0x28] sm:$0xff]   ;;  %v222_v7 = vld [vmem:[#allocation2 + $0x30] sm:$0xff]   ;;  %v223_v8 = vld [vmem:[#allocation2 + $0x38] sm:$0xff]  }
  0x15   :  { %193 = vmatprep.subr.bf16.mxu0 %v252_v0  ;;  %v224_v9 = vld [vmem:[%s298_s0] sm:$0xff]  }
  0x16   :  { %v181_v10 = vld [vmem:[%s300_s2] ss:$0 sm:$0xff] }
  0x18   :  { %194 = vmatpush3.bf16.msra.mxu0 %v217_v2 }
  0x19   :  { %195 = vmatprep.subr.bf16.mxu0 %v252_v0 }
  0x1c   :  { %196 = vmatpush3.bf16.msra.mxu0 %v218_v3 }
  0x1d   :  { %197 = vmatprep.subr.bf16.mxu0 %v252_v0 }
  0x20   :  { %198 = vmatpush3.bf16.msra.mxu0 %v219_v4 }
  0x21   :  { %199 = vmatprep.subr.bf16.mxu0 %v252_v0 }
  0x24   :  { %200 = vmatpush3.bf16.msra.mxu0 %v220_v5 }
  0x25   :  { %201 = vmatprep.subr.bf16.mxu0 %v252_v0 }
  0x28   :  { %202 = vmatpush3.bf16.msra.mxu0 %v221_v6 }
  0x29   :  { %203 = vmatprep.subr.bf16.mxu0 %v252_v0 }
  0x2c   :  { %204 = vmatpush3.bf16.msra.mxu0 %v222_v7 }
  0x2d   :  { %205 = vmatprep.subr.bf16.mxu0 %v252_v0 }
  0x30   :  { %206 = vmatpush3.bf16.msra.mxu0 %v223_v8 }
  0x33   :  { %208 = vmatmul.mubr.bf16.vlgmr.msra.gmra.mrb[0].mxu0 %v224_v9 }
 0x106   :  { %v135_v11 = vpop.f32.mrb[0].mxu0 }
 0x107   :  { %v153_v12 = vadd.f32 %v181_v10, %v135_v11  ;;  %v209_v13 = vpop.f32.mrb[1].mxu0 }
 0x108   :  { %v138_v14 = vpop.f32.mrb[2].mxu0 }
 0x109   :  { %155 = vst [vmem:[%s301_s3] sm:$0xff] %v153_v12  ;;  %v154_v15 = vadd.f32 %v181_v10, %v138_v14  ;;  %v210_v16 = vpop.f32.mrb[3].mxu0 }
 0x10b   :  { %156 = vst [vmem:[%s301_s3 + $0x8] sm:$0xff] %v154_v15 }
 0x10c   :  { %171 = vsyncpa [#allocation3], 1 }

</bundles_post_ra>
